<compile_context>
chip_gen: v5e
topology: v5e:2x2
jax: 0.10.0
libtpu: 0.0.40
codegen_flags: <defaults>
</compile_context>

<pallas_src>
import functools

import jax
import jax.numpy as jnp
from jax.experimental import pallas as pl
from jax.experimental.pallas import tpu as pltpu

DROP_P = 0.6          # nn.Dropout(p=0.6)
OBS_DIM = 4           # CartPole-v0 observation_space.shape[0]
HIDDEN = 128
ACTIONS = 2           # CartPole-v0 action_space.n

_KEEP_SCALE = 1.0 / (1.0 - DROP_P)
# Integer-domain dropout threshold on the top 31 random bits (signed compare
# is guaranteed to lower on every TPU generation; 2^-31 quantization of the
# keep probability is negligible and unbiased in practice).
_KEEP_THRESHOLD_I31 = int(DROP_P * (1 << 31))


def _keep_mask(seed, shape):
    """Deterministic per-element dropout keep mask from an integer hash.

    Pure jnp integer ops (iota / mul / xor / logical shift / compare), so it
    runs identically inside a Pallas kernel (Mosaic), in interpret mode, and
    in the plain-JAX reference.
    """
    row = jax.lax.broadcasted_iota(jnp.int32, shape, 0)
    col = jax.lax.broadcasted_iota(jnp.int32, shape, 1)
    idx = (row * shape[1] + col).astype(jnp.uint32)
    z = seed.astype(jnp.uint32) + idx * jnp.uint32(0x9E3779B9)
    # murmur3 finalizer (good avalanche, all VPU work).
    z = z ^ (z >> jnp.uint32(16))
    z = z * jnp.uint32(0x85EBCA6B)
    z = z ^ (z >> jnp.uint32(13))
    z = z * jnp.uint32(0xC2B2AE35)
    z = z ^ (z >> jnp.uint32(16))
    bits31 = (z >> jnp.uint32(1)).astype(jnp.int32)       # uniform in [0, 2^31)
    return bits31 >= jnp.int32(_KEEP_THRESHOLD_I31)        # keep prob = 1 - p


def policy_kernel(seed_ref, b2d_ref, x_ref, w1_ref, b1_ref, w2d_ref, out_ref,
                  *, training):
    # ---- fc_in: (B, 4) @ (4, 128) + (1, 128) ----
    h = jnp.dot(x_ref[...], w1_ref[...],
                preferred_element_type=jnp.float32) + b1_ref[...]

    # ---- dropout(p=0.6) fused with relu (relu(dropout(x)) == dropout(relu(x))
    #      for a positive keep scale): a single select over the (B,128) tile ----
    if training:
        keep = _keep_mask(seed_ref[0], h.shape)
        h = jnp.where(keep & (h > 0.0), h * _KEEP_SCALE, 0.0)
    else:
        h = jnp.maximum(h, 0.0)

    # ---- fc_out + softmax over 2 classes, closed form ----
    # d = l1 - l0 = h @ (w2[:,1]-w2[:,0]) + (b2[1]-b2[0]);  p1 = sigmoid(d)
    d = jnp.sum(h * w2d_ref[...], axis=1, keepdims=True) + b2d_ref[0]
    p1 = 1.0 / (1.0 + jnp.exp(-d))
    out_ref[:, 0:1] = 1.0 - p1
    out_ref[:, 1:2] = p1
    # TODO(synk): torch.distributions.Categorical has no Pallas equivalent; we
    # return the probs tensor that parameterizes it (fusing the action sample +
    # log_prob here would remove a host<->device hop per RL step).


def policy_forward(x, w1, b1, w2, b2, seed, *, training=True):
    """x: (B, OBS_DIM) f32; w1 (4,128), b1 (1,128), w2 (128,2), b2 (1,2).

    Returns the softmax probabilities (B, ACTIONS) f32.
    """
    B = x.shape[0]
    # Precompute the 2-class logit-difference parameters (lane-dense (1,128)).
    w2_diff = (w2[:, 1] - w2[:, 0]).reshape(1, HIDDEN)
    b2_diff = (b2[:, 1] - b2[:, 0]).reshape(1)            # (1,) f32 scalar

    smem = pl.BlockSpec(memory_space=pltpu.MemorySpace.SMEM)
    vmem = pl.BlockSpec(memory_space=pltpu.MemorySpace.VMEM)
    return pl.pallas_call(
        functools.partial(policy_kernel, training=training),
        out_shape=jax.ShapeDtypeStruct((B, ACTIONS), jnp.float32),
        in_specs=[
            smem,   # seed (1,) int32
            smem,   # b2_diff (1,) f32
            vmem,   # x (B, 4)
            vmem,   # w1 (4, 128)
            vmem,   # b1 (1, 128)
            vmem,   # w2_diff (1, 128)
        ],
        out_specs=vmem,
    )(seed, b2_diff, x, w1, b1, w2_diff)


def policy_reference(x, w1, b1, w2, b2, seed, *, training=True):
    """Plain-JAX reference with the exact same dropout mask."""
    h = jnp.dot(x, w1, precision=jax.lax.Precision.HIGHEST) + b1
    if training:
        keep = _keep_mask(seed, h.shape)
        h = jnp.where(keep, h * _KEEP_SCALE, 0.0)
    h = jnp.maximum(h, 0.0)
    logits = jnp.dot(h, w2, precision=jax.lax.Precision.HIGHEST) + b2
    return jax.nn.softmax(logits, axis=1)


def init_params(key):
    """Deterministic init mimicking PyTorch Linear default (uniform +-1/sqrt(fan_in))."""
    k1, k2, k3, k4 = jax.random.split(key, 4)
    lim1 = 1.0 / jnp.sqrt(jnp.float32(OBS_DIM))
    lim2 = 1.0 / jnp.sqrt(jnp.float32(HIDDEN))
    w1 = jax.random.uniform(k1, (OBS_DIM, HIDDEN), jnp.float32, -lim1, lim1)
    b1 = jax.random.uniform(k2, (1, HIDDEN), jnp.float32, -lim1, lim1)
    w2 = jax.random.uniform(k3, (HIDDEN, ACTIONS), jnp.float32, -lim2, lim2)
    b2 = jax.random.uniform(k4, (1, ACTIONS), jnp.float32, -lim2, lim2)
    return w1, b1, w2, b2


if __name__ == "__main__":
    key = jax.random.PRNGKey(0)
    k_param, k_x = jax.random.split(key)
    w1, b1, w2, b2 = init_params(k_param)

    B = 8  # small batch of CartPole observations (8 sublanes = one f32 vreg row)
    x = jax.random.normal(k_x, (B, OBS_DIM), jnp.float32)
    seed = jnp.array([1234], dtype=jnp.int32)

    probs = policy_forward(x, w1, b1, w2, b2, seed, training=True)
    probs = jax.block_until_ready(probs)

    assert probs.shape == (B, ACTIONS)
    assert bool(jnp.all(jnp.isfinite(probs)))
    assert bool(jnp.allclose(jnp.sum(probs, axis=1), 1.0, atol=1e-5))

    ref = policy_reference(x, w1, b1, w2, b2, seed[0], training=True)
    assert bool(jnp.allclose(probs, ref, atol=2e-3)), (probs, ref)

    print("KERNEL_OK")
</pallas_src>

<mosaic_0001>
module attributes {stable_mosaic.version = 11 : i64} {
  func.func @policy_kernel(%arg0: memref<1xi32, #tpu.memory_space<smem>>, %arg1: memref<1xf32, #tpu.memory_space<smem>>, %arg2: memref<8x4xf32, #tpu.memory_space<vmem>>, %arg3: memref<4x128xf32, #tpu.memory_space<vmem>>, %arg4: memref<1x128xf32, #tpu.memory_space<vmem>>, %arg5: memref<1x128xf32, #tpu.memory_space<vmem>>, %arg6: memref<8x2xf32, #tpu.memory_space<vmem>>) attributes {dimension_semantics = [], scalar_prefetch = 0 : i64, scratch_operands = 0 : i64, tpu.core_type = #tpu.core_type<tc>} {
    %c0 = arith.constant 0 : index
    %c0_0 = arith.constant 0 : index
    %0 = vector.load %arg2[%c0, %c0_0] : memref<8x4xf32, #tpu.memory_space<vmem>>, vector<8x4xf32>
    %c0_1 = arith.constant 0 : index
    %c0_2 = arith.constant 0 : index
    %1 = vector.load %arg3[%c0_1, %c0_2] : memref<4x128xf32, #tpu.memory_space<vmem>>, vector<4x128xf32>
    %cst = arith.constant dense<0.000000e+00> : vector<8x128xf32>
    %2 = tpu.matmul %0, %1, %cst {dimension_numbers = #tpu.dot_dimension_numbers<[1], [0], [0], [1], [0, 0, 1, 1], [], []>} : vector<8x4xf32>, vector<4x128xf32>, vector<8x128xf32> -> vector<8x128xf32>
    %c0_3 = arith.constant 0 : index
    %c0_4 = arith.constant 0 : index
    %3 = vector.load %arg4[%c0_3, %c0_4] : memref<1x128xf32, #tpu.memory_space<vmem>>, vector<1x128xf32>
    %4 = vector.broadcast %3 : vector<1x128xf32> to vector<8x128xf32>
    %5 = arith.addf %2, %4 : vector<8x128xf32>
    %c0_5 = arith.constant 0 : index
    %6 = memref.load %arg0[%c0_5] : memref<1xi32, #tpu.memory_space<smem>>
    %7 = tpu.iota {dimensions = array<i32: 0>} : vector<8x128xi32>
    %8 = tpu.iota {dimensions = array<i32: 1>} : vector<8x128xi32>
    %c128_i32 = arith.constant 128 : i32
    %9 = vector.broadcast %c128_i32 : i32 to vector<8x128xi32>
    %10 = arith.muli %7, %9 : vector<8x128xi32>
    %11 = arith.addi %10, %8 : vector<8x128xi32>
    %c-1640531527_i32 = arith.constant -1640531527 : i32
    %12 = vector.broadcast %c-1640531527_i32 : i32 to vector<8x128xi32>
    %13 = arith.muli %11, %12 : vector<8x128xi32>
    %14 = vector.broadcast %6 : i32 to vector<8x128xi32>
    %15 = arith.addi %14, %13 : vector<8x128xi32>
    %c16_i32 = arith.constant 16 : i32
    %16 = vector.broadcast %c16_i32 : i32 to vector<8x128xi32>
    %17 = arith.shrui %15, %16 : vector<8x128xi32>
    %18 = arith.xori %15, %17 : vector<8x128xi32>
    %c-2048144789_i32 = arith.constant -2048144789 : i32
    %19 = vector.broadcast %c-2048144789_i32 : i32 to vector<8x128xi32>
    %20 = arith.muli %18, %19 : vector<8x128xi32>
    %c13_i32 = arith.constant 13 : i32
    %21 = vector.broadcast %c13_i32 : i32 to vector<8x128xi32>
    %22 = arith.shrui %20, %21 : vector<8x128xi32>
    %23 = arith.xori %20, %22 : vector<8x128xi32>
    %c-1028477387_i32 = arith.constant -1028477387 : i32
    %24 = vector.broadcast %c-1028477387_i32 : i32 to vector<8x128xi32>
    %25 = arith.muli %23, %24 : vector<8x128xi32>
    %c16_i32_6 = arith.constant 16 : i32
    %26 = vector.broadcast %c16_i32_6 : i32 to vector<8x128xi32>
    %27 = arith.shrui %25, %26 : vector<8x128xi32>
    %28 = arith.xori %25, %27 : vector<8x128xi32>
    %c1_i32 = arith.constant 1 : i32
    %29 = vector.broadcast %c1_i32 : i32 to vector<8x128xi32>
    %30 = arith.shrui %28, %29 : vector<8x128xi32>
    %c1288490188_i32 = arith.constant 1288490188 : i32
    %31 = vector.broadcast %c1288490188_i32 : i32 to vector<8x128xi32>
    %32 = arith.cmpi sge, %30, %31 : vector<8x128xi32>
    %cst_7 = arith.constant 0.000000e+00 : f32
    %33 = vector.broadcast %cst_7 : f32 to vector<8x128xf32>
    %34 = arith.cmpf ogt, %5, %33 : vector<8x128xf32>
    %35 = arith.andi %32, %34 : vector<8x128xi1>
    %cst_8 = arith.constant 2.500000e+00 : f32
    %36 = vector.broadcast %cst_8 : f32 to vector<8x128xf32>
    %37 = arith.mulf %5, %36 : vector<8x128xf32>
    %cst_9 = arith.constant 0.000000e+00 : f32
    %38 = vector.broadcast %cst_9 : f32 to vector<8x128xf32>
    %39 = arith.select %35, %37, %38 : vector<8x128xi1>, vector<8x128xf32>
    %c0_10 = arith.constant 0 : index
    %c0_11 = arith.constant 0 : index
    %40 = vector.load %arg5[%c0_10, %c0_11] : memref<1x128xf32, #tpu.memory_space<vmem>>, vector<1x128xf32>
    %41 = vector.broadcast %40 : vector<1x128xf32> to vector<8x128xf32>
    %42 = arith.mulf %39, %41 : vector<8x128xf32>
    %cst_12 = arith.constant dense<0.000000e+00> : vector<8xf32>
    %43 = vector.multi_reduction <add>, %42, %cst_12 [1] : vector<8x128xf32> to vector<8xf32>
    %44 = vector.shape_cast %43 : vector<8xf32> to vector<8x1xf32>
    %c0_13 = arith.constant 0 : index
    %45 = memref.load %arg1[%c0_13] : memref<1xf32, #tpu.memory_space<smem>>
    %46 = vector.broadcast %45 : f32 to vector<8x1xf32>
    %47 = arith.addf %44, %46 : vector<8x1xf32>
    %cst_14 = arith.constant 0.000000e+00 : f32
    %48 = vector.broadcast %cst_14 : f32 to vector<8x1xf32>
    %49 = arith.subf %48, %47 : vector<8x1xf32>
    %50 = math.exp %49 : vector<8x1xf32>
    %cst_15 = arith.constant 1.000000e+00 : f32
    %51 = vector.broadcast %cst_15 : f32 to vector<8x1xf32>
    %52 = arith.addf %51, %50 : vector<8x1xf32>
    %cst_16 = arith.constant 1.000000e+00 : f32
    %53 = vector.broadcast %cst_16 : f32 to vector<8x1xf32>
    %54 = arith.divf %53, %52 : vector<8x1xf32>
    %cst_17 = arith.constant 1.000000e+00 : f32
    %55 = vector.broadcast %cst_17 : f32 to vector<8x1xf32>
    %56 = arith.subf %55, %54 : vector<8x1xf32>
    %c0_18 = arith.constant 0 : index
    %c0_19 = arith.constant 0 : index
    %57 = vector.load %arg6[%c0_18, %c0_19] : memref<8x2xf32, #tpu.memory_space<vmem>>, vector<8x1xf32>
    tpu.vector_store %arg6[%c0_18, %c0_19], %56 {strides = array<i32>} : memref<8x2xf32, #tpu.memory_space<vmem>>, vector<8x1xf32>,
    %c0_20 = arith.constant 0 : index
    %c1 = arith.constant 1 : index
    %58 = vector.load %arg6[%c0_20, %c1] : memref<8x2xf32, #tpu.memory_space<vmem>>, vector<8x1xf32>
    tpu.vector_store %arg6[%c0_20, %c1], %54 {strides = array<i32>} : memref<8x2xf32, #tpu.memory_space<vmem>>, vector<8x1xf32>,
    return
  }
}

</mosaic_0001>

<bundles_post_ra>
// kernel: tpu_custom_call.1
= control target key start
LH: loop header
LB: loop body
LE: loop exit
PB: predicated region body
PF: predicated region fallthrough
CT: control target
= control target key end

     0   :  { %vm35_vm0 = vcmask 1043456   ;;  %vm31_vm1 = vcmask 31744   ;;  %v60_v2 = vlaneseq  ;;  %vm113_vm9 = vcmask 7168   ;;  %s188_s3 = inlined_call_operand.vmem [shape: f32[4,128], index: 3, kind: input, shape index: {}]   ;;  %s189_s2 = inlined_call_operand.vmem [shape: f32[8,4], index: 2, kind: input, shape index: {}]   ;;  %s190_s4 = inlined_call_operand.vmem [shape: f32[1,128], index: 4, kind: input, shape index: {}]   ;;  %s191_s5 = inlined_call_operand.vmem [shape: f32[1,128], index: 5, kind: input, shape index: {}]   ;;  %s192_s0 = inlined_call_operand.<no memory space> [shape: s32[1], index: 0, kind: input, shape index: {}]   ;;  %s193_s1 = inlined_call_operand.<no memory space> [shape: f32[1], index: 1, kind: input, shape index: {}]   ;;  %s194_s6 = inlined_call_operand.vmem [shape: f32[8,2], index: 6, kind: output, shape index: {}]  }
   0x1   :  { %v26_v0 = vld [vmem:[%s188_s3] sm:$0xf]  ;;  %v67_v8 = vstv %s192_s0  ;;  %v91_v26 = vstv %s193_s1  ;;  %vm115_vm10 = vcmask 15368  }
   0x2   :  { %v25_v1 = vld [vmem:[%s189_s2] sm:$0xff]  ;;  %121 = vmatpush.msk.msra.mxu0 %vm35_vm0, %v26_v0  ;;  %v61_v3 = vshrl.u32 %v60_v2, 7  ;;  %v63_v4 = vand.u32 127, %v60_v2 }
   0x3   :  { %122 = vmatmul.msk.f32.vlgmr.msra.gmra.mxu0 %vm31_vm1, %v25_v1  ;;  %v123_v18 = vld [vmem:[%s190_s4] ss:$0 sm:$0xff] }
   0x4   :  { %v64_v5 = vmul.u32 128, %v61_v3  ;;  %v124_v22 = vld [vmem:[%s191_s5] ss:$0 sm:$0xff] }
   0x6   :  { %v65_v6 = vadd.s32 %v64_v5, %v63_v4 }
   0x8   :  { %v66_v7 = vmul.u32 2654435769, %v65_v6 }
   0xa   :  { %v68_v9 = vadd.s32 %v67_v8, %v66_v7 }
   0xc   :  { %v69_v10 = vshrl.u32 %v68_v9, 16 }
   0xe   :  { %v70_v11 = vxor.u32 %v69_v10, %v68_v9 }
  0x10   :  { %v71_v12 = vmul.u32 2246822507, %v70_v11 }
  0x12   :  { %v72_v13 = vshrl.u32 %v71_v12, 13 }
  0x14   :  { %v73_v14 = vxor.u32 %v72_v13, %v71_v12 }
  0x16   :  { %v74_v15 = vmul.u32 3266489909, %v73_v14 }
  0x18   :  { %v75_v16 = vshrl.u32 %v74_v15, 16 }
  0x1a   :  { %v76_v17 = vxor.u32 %v75_v16, %v74_v15 }
  0x1c   :  { %v77_v19 = vshrl.u32 %v76_v17, 1 }
  0x1e   :  { %vm78_vm2 = vcmp.ge.s32.totalorder %v77_v19, 1288490188 }
  0x80   :  { %v56_v20 = vpop.f32.mrf.mxu0 }
  0x81   :  { %v57_v21 = vadd.f32 %v123_v18, %v56_v20 }
  0x83   :  { %vm79_vm3 = vcmp.gt.f32.partialorder %v57_v21, 0.0  ;;  %v81_v23 = vmul.f32 2.5, %v57_v21 }
  0x84   :  { %vm80_vm4 = vmand %vm78_vm2, %vm79_vm3 }
  0x85   :  { %v82_v24 = vsel %vm80_vm4, %v81_v23, 0.0 }
  0x86   :  { %v87_v25 = vmul.f32 %v124_v22, %v82_v24 }
  0x88   :  { %88 = vadd.xlane.f32.xlu0 %v87_v25 }
  0xfb   :  { %v89_v27 = vpop.xlane.xlu0 %88 }
  0xfc   :  { %v92_v28 = vadd.f32 %v91_v26, %v89_v27 }
  0xfe   :  { %v93_v29 = vsub.f32 0.0, %v92_v28 }
 0x100   :  { %v94_v30 = vmul.f32 1.442695, %v93_v29 }
 0x102   :  { %125 = vpow2.f32 %v94_v30 }
 0x108   :  { %v126_v31 = vpop.eup %125 }
 0x109   :  { %v96_v32 = vadd.f32 1.0, %v126_v31 }
 0x10b   :  { %127 = vrcp.f32 %v96_v32  ;;  %v108_v36 = vand.u32 2147483648, %v96_v32  ;;  %v106_v38 = vand.u32 2147483647, %v96_v32  ;;  %vm102_vm6 = vweird.f32 %v96_v32 }
 0x10d   :  { %v109_v40 = vor.u32 1.1754944e-38, %v108_v36  ;;  %vm107_vm8 = vcmp.eq.f32.partialorder %v106_v38, 8.507059e+37 }
 0x111   :  { %v128_v33 = vpop.eup %127 }
 0x112   :  { %v98_v34 = vmul.f32 %v128_v33, %v96_v32  ;;  %vm103_vm5 = vweird.f32 %v128_v33 }
 0x113   :  { %vm104_vm7 = vmor %vm102_vm6, %vm103_vm5 }
 0x114   :  { %v99_v35 = vsub.f32 1.0, %v98_v34 }
 0x116   :  { %v100_v37 = vmul.f32 %v128_v33, %v99_v35 }
 0x118   :  { %v101_v39 = vadd.f32 %v128_v33, %v100_v37 }
 0x11a   :  { %v105_v41 = vsel %vm104_vm7, %v128_v33, %v101_v39 }
 0x11b   :  { %v110_v42 = vsel %vm107_vm8, %v109_v40, %v105_v41 }
 0x11c   :  { %v112_v43 = vsub.f32 1.0, %v110_v42 }
 0x11e   :  { %114 = vst.msk [vmem:[%s194_s6] sm:$0xff] %vm113_vm9, %v112_v43 }
 0x11f   :  { %116 = vst.msk [vmem:[%s194_s6] sm:$0xff] %vm115_vm10, %v110_v42 }

</bundles_post_ra>
